<compile_context>
chip_gen: v7x
topology: tpu7x:2x2x1
jax: 0.10.0
libtpu: 0.0.40
codegen_flags: <defaults>
</compile_context>

<pallas_src>
import functools
import math

import jax
import jax.numpy as jnp
from jax import lax
from jax.experimental import pallas as pl
from jax.experimental.pallas import tpu as pltpu


def _coors_norm_kernel(scale_ref, x_ref, o_ref, *, D, eps):
    # x_ref / o_ref: (tile_m, D*128) block.  Lane j of a row holds coordinate
    # (j % D) of point (j // D) within that row's group of 128 points.
    xf = x_ref[...].astype(jnp.float32)            # no-op when input is f32
    C = xf.shape[-1]                               # = D * 128

    # Sum of squares over each group of D consecutive lanes.
    # gs[j] = sq[j] + sq[j+1] + ... + sq[j+D-1]; valid at group heads (j%D==0).
    sq = xf * xf
    gs = sq
    for k in range(1, D):
        gs = gs + pltpu.roll(sq, shift=C - k, axis=1)

    # Per-point factor: scale / max(||p||, eps) == scale * rsqrt(max(||p||^2, eps^2)).
    t = lax.rsqrt(jnp.maximum(gs, jnp.float32(eps * eps))) * scale_ref[0]

    # Keep head lanes only, then rotate-accumulate to broadcast each point's
    # factor to all D of its lanes (wrapped contributions are zero or masked).
    lane = lax.broadcasted_iota(jnp.int32, (1, C), 1)
    s = jnp.where(lane % D == 0, t, jnp.float32(0.0))
    full = s
    for k in range(1, D):
        full = full + pltpu.roll(s, shift=k, axis=1)

    o_ref[...] = (xf * full).astype(o_ref.dtype)


def _coors_norm_xla(coors, scale, eps):
    """Fused-XLA fallback / reference (matches the PyTorch module)."""
    x = coors.astype(jnp.float32)
    norm = jnp.sqrt(jnp.sum(x * x, axis=-1, keepdims=True))
    s = jnp.asarray(scale, jnp.float32).reshape(-1)[0]
    return ((x / jnp.maximum(norm, eps)) * s).astype(coors.dtype)


def coors_norm(coors, scale, *, eps=1e-8, tile_m=None, min_rows=2048):
    """CoorsNorm forward. coors: (..., D) array, scale: (1,) array."""
    orig_shape = coors.shape
    D = int(orig_shape[-1])
    rows = math.prod(orig_shape[:-1]) if len(orig_shape) > 1 else 1

    # Small or non-128-aligned point counts: plain fused XLA wins (no launch
    # overhead, no padding copy).
    if rows < max(min_rows, 1) or rows % 128 != 0 or not (1 <= D <= 8):
        return _coors_norm_xla(coors, scale, eps)

    C = D * 128
    M = rows // 128
    xflat = coors.reshape(M, C)          # free view: contiguous row-major

    # Per-generation VMEM budget (v7x: 64 MiB/TC; v5e/v6e: 128 MiB).
    try:
        vmem_cap = int(pltpu.get_tpu_info().vmem_capacity_bytes)
    except Exception:
        vmem_cap = 64 * 1024 * 1024      # conservative default (v7x per-TC)
    vmem_budget = int(vmem_cap * 0.6)    # explicit scoped-VMEM limit, with headroom

    if tile_m is None:
        # 2x double-buffered (in + out) blocks plus compiler temps for the f32
        # intermediates -> budget roughly 10 block-sized buffers.
        block_target = vmem_budget // 10
        tile_m = max(8, (block_target // (C * 4)) // 8 * 8)
        tile_m = min(tile_m, 8192)
        if M >= 16:
            # Keep at least two grid steps so v7x's two TensorCores both run.
            tile_m = min(tile_m, ((pl.cdiv(M, 2) + 7) // 8) * 8)
    tile_m = int(min(tile_m, M))
    if tile_m < M:
        tile_m = max(8, (tile_m // 8) * 8)   # (8,128) divisibility for partial blocks
    grid = (pl.cdiv(M, tile_m),)

    scale_arr = jnp.asarray(scale, jnp.float32).reshape(1)

    out_flat = pl.pallas_call(
        functools.partial(_coors_norm_kernel, D=D, eps=float(eps)),
        out_shape=jax.ShapeDtypeStruct((M, C), coors.dtype),
        grid=grid,
        in_specs=[
            pl.BlockSpec(memory_space=pltpu.MemorySpace.SMEM),   # scale scalar
            pl.BlockSpec((tile_m, C), lambda i: (i, 0)),         # coords block
        ],
        out_specs=pl.BlockSpec((tile_m, C), lambda i: (i, 0)),
        compiler_params=pltpu.CompilerParams(
            dimension_semantics=("parallel",),
            vmem_limit_bytes=vmem_budget,
        ),
    )(scale_arr, xflat)

    return out_flat.reshape(orig_shape)


if __name__ == "__main__":
    key = jax.random.PRNGKey(0)
    k1, k2, k3 = jax.random.split(key, 3)

    eps = 1e-8
    scale = jnp.ones((1,), dtype=jnp.float32)            # scale_init = 1.0

    # 1) Pallas fast path: (batch=2, points=1024, coord_dim=3) -> rows = 2048.
    coors = jax.random.normal(k1, (2, 1024, 3), dtype=jnp.float32)
    out = jax.block_until_ready(coors_norm(coors, scale, eps=eps))
    ref = _coors_norm_xla(coors, scale, eps)
    assert out.shape == coors.shape and out.dtype == coors.dtype
    assert jnp.allclose(out, ref, atol=1e-5, rtol=1e-5)

    # 2) Pallas path, forced small tile: multi-step grid + ragged last block,
    #    and a non-unit scale to exercise the learnable parameter.
    scale2 = jnp.full((1,), 0.5, dtype=jnp.float32)
    coors2 = jax.random.normal(k2, (1, 13 * 128, 3), dtype=jnp.float32)
    out2 = jax.block_until_ready(
        coors_norm(coors2, scale2, eps=eps, tile_m=8, min_rows=0))
    ref2 = _coors_norm_xla(coors2, scale2, eps)
    assert out2.shape == coors2.shape
    assert jnp.allclose(out2, ref2, atol=1e-5, rtol=1e-5)

    # 3) Tiny input (common small-graph case) -> fused XLA fallback.
    coors3 = jax.random.normal(k3, (2, 8, 3), dtype=jnp.float32)
    out3 = jax.block_until_ready(coors_norm(coors3, scale, eps=eps))
    ref3 = _coors_norm_xla(coors3, scale, eps)
    assert jnp.allclose(out3, ref3, atol=1e-6, rtol=1e-6)

    print("KERNEL_OK")
</pallas_src>

<mosaic_0001>
module attributes {stable_mosaic.version = 11 : i64} {
  func.func @_coors_norm_kernel(%arg0: i32, %arg1: memref<1xf32, #tpu.memory_space<smem>>, %arg2: memref<8x384xf32, #tpu.memory_space<vmem>>, %arg3: memref<8x384xf32, #tpu.memory_space<vmem>>) attributes {dimension_semantics = [#tpu.dimension_semantics<parallel>], iteration_bounds = array<i64: 2>, scalar_prefetch = 0 : i64, scratch_operands = 0 : i64, tpu.core_type = #tpu.core_type<tc>, window_params = [{transform_indices = @transform_0, window_bounds = array<i64: 1>}, {transform_indices = @transform_1, window_bounds = array<i64: 8, 384>}, {transform_indices = @transform_2, window_bounds = array<i64: 8, 384>}]} {
    %c0 = arith.constant 0 : index
    %c0_0 = arith.constant 0 : index
    %0 = vector.load %arg2[%c0, %c0_0] : memref<8x384xf32, #tpu.memory_space<vmem>>, vector<8x384xf32>
    %1 = arith.mulf %0, %0 : vector<8x384xf32>
    %c383_i32 = arith.constant 383 : i32
    %2 = tpu.dynamic_rotate %1 by %c383_i32 dim 1 : vector<8x384xf32>, i32 -> vector<8x384xf32>
    %3 = arith.addf %1, %2 : vector<8x384xf32>
    %c382_i32 = arith.constant 382 : i32
    %4 = tpu.dynamic_rotate %1 by %c382_i32 dim 1 : vector<8x384xf32>, i32 -> vector<8x384xf32>
    %5 = arith.addf %3, %4 : vector<8x384xf32>
    %cst = arith.constant 1.000000e-16 : f32
    %6 = vector.broadcast %cst : f32 to vector<8x384xf32>
    %7 = arith.maximumf %5, %6 : vector<8x384xf32>
    %8 = math.rsqrt %7 : vector<8x384xf32>
    %c0_1 = arith.constant 0 : index
    %9 = memref.load %arg1[%c0_1] : memref<1xf32, #tpu.memory_space<smem>>
    %10 = vector.broadcast %9 : f32 to vector<8x384xf32>
    %11 = arith.mulf %8, %10 : vector<8x384xf32>
    %12 = tpu.iota {dimensions = array<i32: 1>} : vector<1x384xi32>
    %c3_i32 = arith.constant 3 : i32
    %c0_i32 = arith.constant 0 : i32
    %13 = arith.cmpi eq, %c3_i32, %c0_i32 : i32
    %c1_i32 = arith.constant 1 : i32
    %14 = arith.select %13, %c1_i32, %c3_i32 : i32
    %15 = vector.broadcast %14 : i32 to vector<1x384xi32>
    %16 = arith.remsi %12, %15 : vector<1x384xi32>
    %c0_i32_2 = arith.constant 0 : i32
    %17 = vector.broadcast %c0_i32_2 : i32 to vector<1x384xi32>
    %18 = arith.cmpi ne, %16, %17 : vector<1x384xi32>
    %c0_i32_3 = arith.constant 0 : i32
    %19 = vector.broadcast %c0_i32_3 : i32 to vector<1x384xi32>
    %20 = arith.cmpi slt, %16, %19 : vector<1x384xi32>
    %c0_i32_4 = arith.constant 0 : i32
    %21 = arith.cmpi slt, %14, %c0_i32_4 : i32
    %22 = vector.broadcast %21 : i1 to vector<1x384xi1>
    %23 = vector.broadcast %22 : vector<1x384xi1> to vector<1x384xi1>
    %24 = arith.xori %20, %23 : vector<1x384xi1>
    %25 = arith.andi %24, %18 : vector<1x384xi1>
    %26 = vector.broadcast %14 : i32 to vector<1x384xi32>
    %27 = arith.addi %16, %26 : vector<1x384xi32>
    %28 = arith.select %25, %27, %16 : vector<1x384xi1>, vector<1x384xi32>
    %c0_i32_5 = arith.constant 0 : i32
    %29 = vector.broadcast %c0_i32_5 : i32 to vector<1x384xi32>
    %30 = arith.cmpi eq, %28, %29 : vector<1x384xi32>
    %cst_6 = arith.constant 0.000000e+00 : f32
    %31 = vector.shape_cast %30 : vector<1x384xi1> to vector<1x384xi1>
    %32 = vector.broadcast %31 : vector<1x384xi1> to vector<8x384xi1>
    %33 = vector.broadcast %cst_6 : f32 to vector<8x384xf32>
    %34 = arith.select %32, %11, %33 : vector<8x384xi1>, vector<8x384xf32>
    %c1_i32_7 = arith.constant 1 : i32
    %35 = tpu.dynamic_rotate %34 by %c1_i32_7 dim 1 : vector<8x384xf32>, i32 -> vector<8x384xf32>
    %36 = arith.addf %34, %35 : vector<8x384xf32>
    %c2_i32 = arith.constant 2 : i32
    %37 = tpu.dynamic_rotate %34 by %c2_i32 dim 1 : vector<8x384xf32>, i32 -> vector<8x384xf32>
    %38 = arith.addf %36, %37 : vector<8x384xf32>
    %39 = arith.mulf %0, %38 : vector<8x384xf32>
    %c0_8 = arith.constant 0 : index
    %c0_9 = arith.constant 0 : index
    %40 = vector.load %arg3[%c0_8, %c0_9] : memref<8x384xf32, #tpu.memory_space<vmem>>, vector<8x384xf32>
    tpu.vector_store %arg3[%c0_8, %c0_9], %39 {strides = array<i32>} : memref<8x384xf32, #tpu.memory_space<vmem>>, vector<8x384xf32>,
    return
  }
  func.func @transform_0(%arg0: i32) -> i32 {
    %c0_i32 = arith.constant 0 : i32
    %c0_i32_0 = arith.constant 0 : i32
    return %c0_i32 : i32
  }
  func.func @transform_1(%arg0: i32) -> (i32, i32) {
    %c0_i32 = arith.constant 0 : i32
    %c0_i32_0 = arith.constant 0 : i32
    return %arg0, %c0_i32 : i32, i32
  }
  func.func @transform_2(%arg0: i32) -> (i32, i32) {
    %c0_i32 = arith.constant 0 : i32
    %c0_i32_0 = arith.constant 0 : i32
    return %arg0, %c0_i32 : i32, i32
  }
}

</mosaic_0001>

<bundles_post_ra>
// kernel: tpu_custom_call.1
= control target key start
LH: loop header
LB: loop body
LE: loop exit
PB: predicated region body
PF: predicated region fallthrough
CT: control target
= control target key end

     0   :  { %s777_s0 = inlined_call_operand.<no memory space> [shape: f32[1], index: 0, kind: input, shape index: {}]   ;;  %s778_s1 = inlined_call_operand.hbm [shape: f32[16,384], index: 1, kind: input, shape index: {}]   ;;  %s779_s2 = inlined_call_operand.hbm [shape: f32[16,384], index: 2, kind: output, shape index: {}]  }
   0x1   :  { %7 = sst [smem:[#allocation2]] %s777_s0 }
   0x2   :  { %8 = vsyncpa [#allocation4], 0 }
   0x3   :  { %10 = vsyncpa [#allocation4 + $0x1], 0 }
   0x4   :  { %11 = vsyncpa [#allocation5], 0 }
   0x5   :  { %13 = vsyncpa [#allocation5 + $0x1], 0  ;;  %s581_s11 = smov 0   ;;  %s583_s12 = smov 0  }
   0x6   :  { %s585_s13 = smov 0   ;;  %s587_s14 = smov 0  }
   0x7 LB: > { %s602_s0 = sadd.s32 4294967295, %s555_s14   ;;  %s385_s15 = sadd.s32 4294967294, %s555_s14   ;;  %s555_s14 = sphi %s587_s14, %s793_s14   ;;  %s551_s13 = sphi %s585_s13, %s792_s13   ;;  %s547_s12 = sphi %s583_s12, %s791_s12   ;;  %s543_s11 = sphi %s581_s11, %s790_s11  }
   0x8   : > { %s606_s16 = sadd.s32 1, %s555_s14   ;;  %s47_s17 = sadd.s32 1, %s551_s13 }
   0x9   : > { %s44_s18 = ssub.s32 %s555_s14, %s606_s16  ;;  %p54_p0 = scmp.ne.s32.totalorder %s551_s13, %s547_s12 }
   0xa   : > { %p45_p1 = scmp.eq.s32.totalorder %s44_s18, 0  ;;  %p55_p2 = scmp.eq.s32.totalorder %s555_s14, 0 }
   0xb   : > { %p60_p3 = scmp.ne.s32.totalorder %s547_s12, %s543_s11  ;;  %p61_p4 = scmp.eq.s32.totalorder %s602_s0, 0 }
   0xc   : > { %s618_s19 = scalar_select %p45_p1, %s551_s13, %s47_s17  }
   0xd   : > { %p56_p5 = por %p55_p2, %p54_p0  ;;  %p620_p6 = por %p61_p4, %p60_p3 }
   0xe   : > { %p84_p7 = scmp.eq.s32.totalorder %s602_s0, 1  ;;  %p90_p8 = scmp.eq.s32.totalorder %s385_s15, 1 }
   0xf   : > { %p415_p10 = scmp.lt.s32.totalorder %s555_s14, 2  ;;  %s113_s23 = sand.u32 1, %s551_s13  }
  0x10   : > { %p627_p11 = por %p84_p7, %p54_p0  ;;  %p631_p12 = por %p90_p8, %p60_p3 }
  0x11   : > { %s394_s24 = smul.u32 384, %s555_s14  ;;  %p642_p13 = pnand %p415_p10, %p56_p5 }
  0x12   : > { %s782_s21 = scalar_select %p627_p11, 1, 0 }
  0x13   : > { %s783_s22 = scalar_select %p631_p12, 1, 0 }
  0x14   : > { %s393_s25 = smul.u32 24, %s113_s23  ;;  %s640_s28 = scalar_lea.hbm %s778_s1, %s394_s24 }
  0x15   : > { %s114_s4 = scalar_lea.sflag [#allocation4], %s113_s23  ;;  %s459_s5 = scalar_lea.hbm %s640_s28, 384 }
  0x16   : > { %s117_s30 = scalar_lea.vmem [#allocation3], %s393_s25  ;;  %p460_p2 = scmp.ne.s32.totalorder %s640_s28, %s459_s5 }
  0x17   : > { %s125_s3 = sshll.u32 %s117_s30, 4  ;;  %p461_p3 = pneg %p642_p13  ;;  %s647_s3 = int_to_ptr.vmem [resolvable:$true] %s125_s3 }
  0x18   : > { %s464_s8 = scalar_lea.hbm %s778_s1, 768  ;;  %p465_p7 = scmp.lt.u32.totalorder %s640_s28, %s778_s1 }
  0x19   : > { %p462_p4 = pnand %p461_p3, %p460_p2  ;;  %p466_p8 = scmp.lt.u32.totalorder %s464_s8, %s459_s5 }
  0x1a   : > { %p468_p9 = scmp.lt.u32.totalorder %s459_s5, %s640_s28 }
  0x1b   : > { %p463_p5 = pneg %p462_p4  ;;  %p467_p10 = por %p466_p8, %p465_p7 }
  0x1d   : > { %p469_p0 = por %p468_p9, %p467_p10 }
  0x1f   : > { %p470_p1 = pnand %p469_p0, %p463_p5 }
  0x21   : > { %473 = shalt.err (!%p470_p1)
}
  0x22   : > { %s474_s15 = scalar_lea.vmem %s647_s3, 384  ;;  %s557_s17 = smov [#allocation3]  }
  0x23   : > { %p475_p2 = scmp.ne.s32.totalorder %s647_s3, %s474_s15  ;;  %s479_s18 = sshll.u32 %s557_s17, 4  ;;  %s480_s18 = int_to_ptr.vmem [resolvable:$false] %s479_s18 }
  0x24   : > { %s481_s23 = scalar_lea.vmem %s480_s18, 768  ;;  %p482_p11 = scmp.lt.s32.totalorder %s647_s3, %s480_s18 }
  0x25   : > { %p477_p4 = pnand %p475_p2, %p461_p3  ;;  %p483_p7 = scmp.lt.s32.totalorder %s481_s23, %s474_s15 }
  0x27   : > { %p478_p12 = pneg %p477_p4  ;;  %p484_p8 = por %p483_p7, %p482_p11 }
  0x29   : > { %p485_p9 = pnand %p484_p8, %p478_p12 }
  0x2b   : > { %488 = shalt.err (!%p485_p9)
}
  0x2c   : > { %410 = dma.hbm_to_vmem [thread:$0]  (!%p642_p13), %s640_s28, 384, %s647_s3, %s114_s4  }
  0x2d   : > { %p785_p0 = scmp.lt.s32.totalorder %s555_s14, 3  ;;  %p786_p1 = scmp.ge.s32.totalorder %s555_s14, 1 }
  0x2f   : > { %p131_p3 = pnand %p786_p1, %p785_p0 }
  0x30   : > { %s680_s24 = sand.u32 (!%p131_p3), 1, %s547_s12  }
  0x31   : > { %134 = sbr.rel (%p131_p3) target bundleno = 346 (0x15a), region = 28  ;;  %s137_s26 = scalar_lea.sflag (!%p131_p3), [#allocation4], %s680_s24 }
  0x32   : > { %s395_s25 = smul.u32 (!%p131_p3), 24, %s680_s24 }
  0x34   : > { %s140_s27 = scalar_lea.vmem (!%p131_p3), [#allocation3], %s395_s25 }
  0x38   : > { %534 = dma.done.wait (%p620_p6), %s137_s26, 384  }
  0x39   : > { %536 = vsyncadd (%p620_p6), %s137_s26, 4294966912  ;;  %v690_v0 = vld [vmem:[%s140_s27 + $0x10] sm:$0xff]  ;;  %v692_v1 = vld [vmem:[%s140_s27] sm:$0xff]  ;;  %s558_s28 = smov 127   ;;  %s559_s20 = smov 126   ;;  %v173_v6 = vlaneseq }
  0x3a   : > { %v694_v2 = vld [vmem:[%s140_s27 + $0x8] sm:$0xff]  ;;  %v166_v3 = vmul.f32 %v690_v0, %v690_v0  ;;  %v164_v4 = vmul.f32 %v692_v1, %v692_v1  ;;  %s201_s29 = sld [smem:[#allocation2]]  ;;  %s560_s30 = smov 1  }
  0x3b   : > { %v165_v5 = vmul.f32 %v694_v2, %v694_v2  ;;  %v702_v7 = vand.u32 127, %v173_v6  ;;  %s561_s3 = smov 2   ;;  %s402_s4 = smul.u32 384, %s602_s0 }
  0x3c   : > { %171 = vrot.lane.b32.xlu1 %v166_v3, %s558_s28  ;;  %167 = vrot.lane.b32.xlu0 %v164_v4, %s558_s28  ;;  %s160_s5 = scalar_lea.vmem [#allocation6], %s395_s25  ;;  %s301_s9 = scalar_lea.sflag [#allocation5], %s680_s24 }
  0x3d   : > { %v206_v8 = vadd.s32 128, %v702_v7  ;;  %v207_v9 = vadd.s32 256, %v702_v7  ;;  %v707_v10 = vmul.u32.u64.low 2863311531, %v702_v7  ;;  %v708_v11 = vmul.u32.u64.high 2863311531, %v702_v7, %v707_v10  ;;  %s315_s6 = sshll.u32 %s160_s5, 4  ;;  %s733_s0 = scalar_lea.hbm %s779_s2, %s402_s4  ;;  %s735_s6 = int_to_ptr.vmem [resolvable:$true] %s315_s6 }
  0x3e   : > { %vm175_vm0 = vcmp.lt.s32.totalorder %v702_v7, 127  ;;  %vm188_vm1 = vcmp.lt.s32.totalorder %v702_v7, 126  ;;  %vm274_vm14 = vcmp.lt.s32.totalorder %v702_v7, 1  ;;  %vm287_vm15 = vcmp.lt.s32.totalorder %v702_v7, 2  ;;  %s489_s10 = scalar_lea.vmem %s735_s6, 384  ;;  %p787_p11 = scmp.ne.s32.totalorder %s782_s21, 0 }
  0x3f   : > { %v710_v12 = vmul.u32.u64.low 2863311531, %v206_v8  ;;  %v711_v13 = vmul.u32.u64.high 2863311531, %v206_v8, %v710_v12  ;;  %v713_v14 = vmul.u32.u64.low 2863311531, %v207_v9  ;;  %v714_v15 = vmul.u32.u64.high 2863311531, %v207_v9, %v713_v14  ;;  %p490_p6 = scmp.ne.s32.totalorder %s735_s6, %s489_s10  ;;  %s562_s15 = smov [#allocation6]  }
  0x40   : > { %182 = vrot.lane.b32.xlu1 %v164_v4, %s559_s20  ;;  %169 = vrot.lane.b32.xlu0 %v165_v5, %s558_s28  ;;  %v214_v20 = vshrl.u32 %v708_v11, 1  ;;  %v202_v50 = vstv %s201_s29  ;;  %s493_s17 = sshll.u32 %s562_s15, 4  ;;  %s494_s17 = int_to_ptr.vmem [resolvable:$false] %s493_s17 }
  0x41   : > { %v225_v24 = vshrl.u32 %v711_v13, 1  ;;  %v236_v25 = vshrl.u32 %v714_v15, 1  ;;  %p491_p12 = pnand %p490_p6, %p787_p11  ;;  %s495_s18 = scalar_lea.vmem %s494_s17, 768 }
  0x42   : > { %v215_v31 = vmul.u32 3, %v214_v20  ;;  %p496_p5 = scmp.lt.s32.totalorder %s735_s6, %s494_s17  ;;  %p497_p10 = scmp.lt.s32.totalorder %s495_s18, %s489_s10 }
  0x43   : > { %v226_v35 = vmul.u32 3, %v225_v24  ;;  %v237_v39 = vmul.u32 3, %v236_v25  ;;  %p492_p13 = pneg %p491_p12 }
  0x44   : > { %186 = vrot.lane.b32.xlu1 %v166_v3, %s559_s20  ;;  %184 = vrot.lane.b32.xlu0 %v165_v5, %s559_s20  ;;  %v216_v43 = vsub.s32 %v702_v7, %v215_v31  ;;  %p498_p2 = por %p497_p10, %p496_p5 }
  0x45   : > { %v227_v44 = vsub.s32 %v206_v8, %v226_v35  ;;  %v238_v45 = vsub.s32 %v207_v9, %v237_v39 }
  0x46   : > { %vm241_vm2 = vcmp.ne.s32.totalorder %v216_v43, 0  ;;  %vm244_vm3 = vcmp.lt.s32.totalorder %v216_v43, 0  ;;  %v250_v46 = vadd.s32 3, %v216_v43  ;;  %p499_p4 = pnand %p498_p2, %p492_p13 }
  0x47   : > { %vm242_vm4 = vcmp.ne.s32.totalorder %v227_v44, 0  ;;  %vm245_vm5 = vcmp.lt.s32.totalorder %v227_v44, 0  ;;  %vm247_vm6 = vmand %vm244_vm3, %vm241_vm2  ;;  %v251_v47 = vadd.s32 3, %v227_v44  ;;  %vm243_vm8 = vcmp.ne.s32.totalorder %v238_v45, 0 }
  0x48   : > { %vm248_vm7 = vmand %vm245_vm5, %vm242_vm4  ;;  %vm246_vm9 = vcmp.lt.s32.totalorder %v238_v45, 0  ;;  %v253_v48 = vsel %vm247_vm6, %v250_v46, %v216_v43  ;;  %v252_v49 = vadd.s32 3, %v238_v45 }
  0x49   : > { %v254_v51 = vsel %vm248_vm7, %v251_v47, %v227_v44  ;;  %vm249_vm10 = vmand %vm246_vm9, %vm243_vm8  ;;  %vm256_vm11 = vcmp.eq.s32.totalorder %v253_v48, 0 }
  0x4a   : > { %vm257_vm12 = vcmp.eq.s32.totalorder %v254_v51, 0  ;;  %v255_v56 = vsel %vm249_vm10, %v252_v49, %v238_v45 }
  0x4b   : > { %vm258_vm13 = vcmp.eq.s32.totalorder %v255_v56, 0 }
  0xae   : > { %v172_v16 = vpop.permute.xlu1 %171  ;;  %v168_v17 = vpop.permute.xlu0 %167 }
  0xaf   : > { %v178_v21 = vsel %vm175_vm0, %v172_v16, %v168_v17 }
  0xb0   : > { %v181_v26 = vadd.f32 %v178_v21, %v166_v3 }
  0xb2   : > { %v183_v18 = vpop.permute.xlu1 %182  ;;  %v170_v19 = vpop.permute.xlu0 %169 }
  0xb3   : > { %v176_v22 = vsel %vm175_vm0, %v170_v19, %v172_v16  ;;  %v177_v23 = vsel %vm175_vm0, %v168_v17, %v170_v19 }
  0xb4   : > { %v179_v27 = vadd.f32 %v177_v23, %v164_v4  ;;  %v180_v28 = vadd.f32 %v176_v22, %v165_v5 }
  0xb6   : > { %v187_v29 = vpop.permute.xlu1 %186  ;;  %v185_v30 = vpop.permute.xlu0 %184 }
  0xb7   : > { %v191_v32 = vsel %vm188_vm1, %v187_v29, %v183_v18  ;;  %v189_v33 = vsel %vm188_vm1, %v185_v30, %v187_v29  ;;  %v190_v34 = vsel %vm188_vm1, %v183_v18, %v185_v30 }
  0xb8   : > { %v194_v36 = vadd.f32 %v191_v32, %v181_v26  ;;  %v192_v37 = vadd.f32 %v190_v34, %v179_v27  ;;  %v193_v38 = vadd.f32 %v189_v33, %v180_v28 }
  0xba   : > { %v197_v40 = vmax.f32 %v194_v36, 1e-16  ;;  %v195_v41 = vmax.f32 %v192_v37, 1e-16  ;;  %v196_v42 = vmax.f32 %v193_v38, 1e-16 }
  0xbc   : > { %453 = vrsqrt.f32 %v197_v40 }
  0xbd   : > { %455 = vrsqrt.f32 %v195_v41 }
  0xbe   : > { %457 = vrsqrt.f32 %v196_v42 }
  0xc6   : > { %v454_v52 = vpop.eup %453 }
  0xc7   : > { %v456_v53 = vpop.eup %455  ;;  %v205_v59 = vmul.f32 %v454_v52, %v202_v50 }
  0xc8   : > { %v458_v54 = vpop.eup %457  ;;  %v203_v55 = vmul.f32 %v456_v53, %v202_v50 }
  0xc9   : > { %v204_v57 = vmul.f32 %v458_v54, %v202_v50  ;;  %v267_v61 = vsel %vm258_vm13, %v205_v59, 0.0 }
  0xca   : > { %v265_v58 = vsel %vm256_vm11, %v203_v55, 0.0 }
  0xcb   : > { %268 = vrot.lane.b32.xlu0 %v265_v58, %s560_s30  ;;  %v266_v60 = vsel %vm257_vm12, %v204_v57, 0.0 }
  0xcc   : > { %270 = vrot.lane.b32.xlu1 %v266_v60, %s560_s30 }
  0xcf   : > { %272 = vrot.lane.b32.xlu0 %v267_v61, %s560_s30 }
  0xd0   : > { %281 = vrot.lane.b32.xlu1 %v265_v58, %s561_s3 }
  0xd3   : > { %283 = vrot.lane.b32.xlu0 %v266_v60, %s561_s3 }
  0xd4   : > { %285 = vrot.lane.b32.xlu1 %v267_v61, %s561_s3 }
 0x13d   : > { %v269_v62 = vpop.permute.xlu0 %268 }
 0x13e   : > { %v271_v63 = vpop.permute.xlu1 %270 }
 0x13f   : > { %v276_v4 = vsel %vm274_vm14, %v269_v62, %v271_v63 }
 0x140   : > { %v279_v9 = vadd.f32 %v276_v4, %v266_v60 }
 0x141   : > { %v273_v3 = vpop.permute.xlu0 %272 }
 0x142   : > { %v282_v5 = vpop.permute.xlu1 %281  ;;  %v275_v6 = vsel %vm274_vm14, %v271_v63, %v273_v3  ;;  %v277_v8 = vsel %vm274_vm14, %v273_v3, %v269_v62 }
 0x143   : > { %v278_v11 = vadd.f32 %v277_v8, %v265_v58  ;;  %v280_v12 = vadd.f32 %v275_v6, %v267_v61 }
 0x145   : > { %v284_v10 = vpop.permute.xlu0 %283 }
 0x146   : > { %v289_v13 = vsel %vm287_vm15, %v282_v5, %v284_v10  ;;  %v286_v14 = vpop.permute.xlu1 %285 }
 0x147   : > { %v292_v15 = vadd.f32 %v289_v13, %v279_v9  ;;  %v288_v16 = vsel %vm287_vm15, %v284_v10, %v286_v14  ;;  %v290_v17 = vsel %vm287_vm15, %v286_v14, %v282_v5 }
 0x148   : > { %v291_v18 = vadd.f32 %v290_v17, %v278_v11  ;;  %v293_v19 = vadd.f32 %v288_v16, %v280_v12 }
 0x149   : > { %v295_v20 = vmul.f32 %v292_v15, %v694_v2 }
 0x14a   : > { %v294_v7 = vmul.f32 %v291_v18, %v692_v1  ;;  %v296_v21 = vmul.f32 %v293_v19, %v690_v0 }
 0x14b   : > { %298 = vst [vmem:[%s160_s5 + $0x8] sm:$0xff] %v295_v20 }
 0x14c   : > { %297 = vst [vmem:[%s160_s5] sm:$0xff] %v294_v7  ;;  %299 = vst [vmem:[%s160_s5 + $0x10] sm:$0xff] %v296_v21 }
 0x14d   : > { %502 = shalt.err (!%p499_p4)
}
 0x14e   : > { %s503_s23 = scalar_lea.hbm %s733_s0, 384  ;;  %s507_s26 = scalar_lea.hbm %s779_s2, 768 }
 0x14f   : > { %p504_p7 = scmp.ne.s32.totalorder %s733_s0, %s503_s23  ;;  %p508_p0 = scmp.lt.u32.totalorder %s733_s0, %s779_s2 }
 0x150   : > { %p509_p1 = scmp.lt.u32.totalorder %s507_s26, %s503_s23  ;;  %p511_p6 = scmp.lt.u32.totalorder %s503_s23, %s733_s0 }
 0x151   : > { %p505_p8 = pnand %p504_p7, %p787_p11 }
 0x152   : > { %p510_p3 = por %p509_p1, %p508_p0 }
 0x153   : > { %p506_p9 = pneg %p505_p8 }
 0x154   : > { %p512_p12 = por %p511_p6, %p510_p3 }
 0x156   : > { %p513_p13 = pnand %p512_p12, %p506_p9 }
 0x158   : > { %516 = shalt.err (!%p513_p13)
}
 0x159   : > { %405 = dma.vmem_to_hbm [thread:$0]  (%p787_p11), %s735_s6, 384, %s733_s0, %s301_s9  }
 0x15a PF: > { %s327_s20 = sand.u32 1, %s543_s11   ;;  %p788_p5 = scmp.ne.s32.totalorder %s783_s22, 0 }
 0x15b   : > { %p789_p10 = scmp.ge.s32.totalorder %s555_s14, 2  ;;  %s328_s29 = scalar_lea.sflag [#allocation5], %s327_s20 }
 0x15d   : > { %p412_p2 = pnand %p789_p10, %p788_p5 }
 0x15f   : > { %538 = dma.done.wait (!%p412_p2), %s328_s29, 384  }
 0x160   : > { %540 = vsyncadd (!%p412_p2), %s328_s29, 4294966912  ;;  %p16_p4 = scmp.ge.s32.totalorder %s606_s16, 4   ;;  %s790_s11 = smov %s547_s12 }
 0x161   : > { %s791_s12 = smov %s551_s13  ;;  %s792_s13 = smov %s618_s19 }
 0x162   : > { %s793_s14 = smov %s606_s16  ;;  %18 = sbr.rel (!%p16_p4) target bundleno = 7 (0x7), region = 73 }
 0x169   :  { %333 = vsyncpa [#allocation4], 1 }
 0x16a   :  { %335 = vsyncpa [#allocation4 + $0x1], 1 }
 0x16b   :  { %336 = vsyncpa [#allocation5], 1 }
 0x16c   :  { %338 = vsyncpa [#allocation5 + $0x1], 1 }

</bundles_post_ra>
